<compile_context>
chip_gen: v5e
topology: v5e:2x2
jax: 0.10.0
libtpu: 0.0.40
codegen_flags: <defaults>
</compile_context>

<pallas_src>
import jax
import jax.numpy as jnp
from jax import lax
from jax.experimental import pallas as pl
from jax.experimental.pallas import tpu as pltpu


_LANES = 128       # vreg lane width
_SUB = 8           # vreg sublane count (accumulator shape (8, 128))
_UNROLL = 8        # independent (8, 128) accumulation chains per tile
_CHUNK_ROWS = 512  # rows loaded per inner step (512*128*4B = 256 KiB f32)
_MIN_ROWS = 64     # minimum tile rows (= _UNROLL * _SUB)


def _round_up(x, m):
    return ((x + m - 1) // m) * m


def _cdiv(a, b):
    return (a + b - 1) // b


def _default_core_splits():
    """2 partial sums on v7x (2 TensorCores per chip), 1 elsewhere."""
    try:
        kind = jax.devices()[0].device_kind.lower()
    except Exception:
        return 1
    return 2 if ("v7" in kind or "tpu7" in kind) else 1


def _make_kernel(tr, chunk, n_chunks, rows, full_tiles, tiles_per_split):
    """Builds the reduction kernel closed over static tiling parameters.

    x_ref: (tr, 128) VMEM tile of the flattened input (native dtype)
    o_ref: (1, 8, 128) f32 accumulator block, resident across grid axis 1
    """

    def _reduce_chunk(k, acc, g, masked):
        off = k * chunk
        xc = x_ref_holder[0][pl.ds(pl.multiple_of(off, chunk), chunk), :]
        xc = xc.astype(jnp.float32)
        if masked:
            # Valid rows remaining in this chunk (may be <= 0 for tiles that
            # were clamped back onto the last block by the index_map).
            rem = rows - g * tr - off
            row = lax.broadcasted_iota(jnp.int32, (chunk, _LANES), 0)
            xc = jnp.where(row < rem, xc, 0.0)
        # (chunk//64, UNROLL, 8, 128): summing axis 0 keeps UNROLL independent
        # (8, 128) accumulation chains -> no long serial vadd dependency.
        xc = xc.reshape(-1, _UNROLL, _SUB, _LANES)
        return acc + jnp.sum(xc, axis=0)

    x_ref_holder = [None]  # closed over so _reduce_chunk can see the ref

    def kernel(x_ref, o_ref):
        x_ref_holder[0] = x_ref
        c = pl.program_id(0)
        i = pl.program_id(1)
        g = c * tiles_per_split + i  # global (unclamped) tile index

        @pl.when(i == 0)
        def _init():
            o_ref[...] = jnp.zeros_like(o_ref)

        zero = jnp.zeros((_UNROLL, _SUB, _LANES), jnp.float32)

        @pl.when(g < full_tiles)
        def _full_tile():
            acc = lax.fori_loop(
                0, n_chunks, lambda k, a: _reduce_chunk(k, a, g, False),
                zero, unroll=True)
            o_ref[...] += jnp.sum(acc, axis=0)[None]

        @pl.when(g >= full_tiles)
        def _tail_tile():
            acc = lax.fori_loop(
                0, n_chunks, lambda k, a: _reduce_chunk(k, a, g, True),
                zero, unroll=True)
            o_ref[...] += jnp.sum(acc, axis=0)[None]

    return kernel


def loss_forward(x_fake, reg=1.0, tile_rows=8192, num_core_splits=None):
    """reg * mean(compute(x_fake)) with compute = identity.  Returns f32 scalar."""
    total = int(x_fake.size)
    itemsize = jnp.dtype(x_fake.dtype).itemsize

    # ---- flatten; pad only when strictly necessary --------------------------
    padded_total = _round_up(total, _LANES)
    rows = padded_total // _LANES
    if rows < _MIN_ROWS:                 # tiny input: one 64-row tile
        rows = _MIN_ROWS
        padded_total = rows * _LANES
    x_flat = x_fake.reshape(-1)
    if padded_total != total:
        # Rare path (numel % 128 != 0 or tiny input): a full copy.  Large
        # typically-shaped activations take the zero-copy reshape path.
        x_flat = jnp.pad(x_flat, (0, padded_total - total))
    x2d = x_flat.reshape(rows, _LANES)

    # ---- tile selection ------------------------------------------------------
    target = max(_MIN_ROWS, (int(tile_rows) // _MIN_ROWS) * _MIN_ROWS)
    if rows >= _CHUNK_ROWS:
        target = max(_CHUNK_ROWS, (target // _CHUNK_ROWS) * _CHUNK_ROWS)
        tr = min(target, (rows // _CHUNK_ROWS) * _CHUNK_ROWS)
    else:
        tr = min(target, (rows // _MIN_ROWS) * _MIN_ROWS)
    tr = max(tr, _MIN_ROWS)
    chunk = min(_CHUNK_ROWS, tr)
    n_chunks = tr // chunk

    tiles = _cdiv(rows, tr)
    full_tiles = rows // tr              # tiles that need no tail mask

    if num_core_splits is None:
        num_core_splits = _default_core_splits()
    splits = max(1, min(int(num_core_splits), tiles))
    tiles_per_split = _cdiv(tiles, splits)

    kernel = _make_kernel(tr, chunk, n_chunks, rows, full_tiles, tiles_per_split)

    partials = pl.pallas_call(
        kernel,
        out_shape=jax.ShapeDtypeStruct((splits, _SUB, _LANES), jnp.float32),
        grid_spec=pltpu.PrefetchScalarGridSpec(
            num_scalar_prefetch=0,
            grid=(splits, tiles_per_split),
            in_specs=[pl.BlockSpec(
                (tr, _LANES),
                # Clamp so a split's overhanging tiles never DMA fully out of
                # bounds; the kernel masks their contribution to zero.
                lambda c, i: (jnp.minimum(c * tiles_per_split + i, tiles - 1), 0),
            )],
            out_specs=pl.BlockSpec((1, _SUB, _LANES), lambda c, i: (c, 0, 0)),
        ),
        compiler_params=pltpu.CompilerParams(
            # axis 0: independent per-core partials; axis 1: reduction.
            dimension_semantics=("parallel", "arbitrary"),
            vmem_limit_bytes=32 * 1024 * 1024,
        ),
        cost_estimate=pl.CostEstimate(
            flops=padded_total,
            transcendentals=0,
            bytes_accessed=padded_total * itemsize + splits * _SUB * _LANES * 4,
        ),
    )(x2d)

    # Tiny finalize: single cross-lane/core reduction of the (splits, 8, 128)
    # partials, then reg * mean using the true (unpadded) element count.
    return (jnp.float32(reg) * jnp.sum(partials)) / jnp.float32(total)


if __name__ == "__main__":
    key = jax.random.PRNGKey(0)

    # deterministic small NCHW input, consistent with the module's forward(x_fake)
    B, C, H, W = 2, 4, 16, 16
    x_fake = jax.random.normal(key, (B, C, H, W), dtype=jnp.float32)

    reg = 1.0
    result = jax.block_until_ready(loss_forward(x_fake, reg=reg))
    ref = reg * jnp.mean(x_fake)
    assert jnp.allclose(result, ref, atol=1e-5, rtol=1e-5), (result, ref)

    # ragged shape (numel not a multiple of 128 -> exercises the pad path)
    x_ragged = jax.random.normal(jax.random.PRNGKey(1), (3, 5, 7, 11),
                                 dtype=jnp.float32)
    res2 = jax.block_until_ready(loss_forward(x_ragged, reg=0.5))
    ref2 = 0.5 * jnp.mean(x_ragged)
    assert jnp.allclose(res2, ref2, atol=1e-5, rtol=1e-5), (res2, ref2)

    # multi-tile input whose last tile is partial (exercises the zero-copy
    # reshape + in-kernel tail-mask path: 2400 rows of 128, tr = 2048)
    x_big = jax.random.normal(jax.random.PRNGKey(2), (4, 8, 96, 100),
                              dtype=jnp.float32)
    res3 = jax.block_until_ready(loss_forward(x_big, reg=2.0))
    ref3 = 2.0 * jnp.mean(x_big)
    assert jnp.allclose(res3, ref3, atol=1e-5, rtol=1e-5), (res3, ref3)

    print("KERNEL_OK")
</pallas_src>

<mosaic_0001>
module attributes {stable_mosaic.version = 11 : i64} {
  func.func @kernel(%arg0: i32, %arg1: i32, %arg2: memref<64x128xf32, #tpu.memory_space<vmem>>, %arg3: memref<1x8x128xf32, #tpu.memory_space<vmem>>) attributes {dimension_semantics = [#tpu.dimension_semantics<parallel>, #tpu.dimension_semantics<arbitrary>], iteration_bounds = array<i64: 1, 1>, scalar_prefetch = 0 : i64, scratch_operands = 0 : i64, tpu.core_type = #tpu.core_type<tc>, window_params = [{transform_indices = @transform_0, window_bounds = array<i64: 64, 128>}, {transform_indices = @transform_1, window_bounds = array<i64: 1, 8, 128>}]} {
    %c1_i32 = arith.constant 1 : i32
    %0 = arith.muli %arg0, %c1_i32 : i32
    %1 = arith.addi %0, %arg1 : i32
    %c0_i32 = arith.constant 0 : i32
    %2 = arith.cmpi eq, %arg1, %c0_i32 : i32
    %3 = arith.extui %2 : i1 to i32
    %c0_i32_0 = arith.constant 0 : i32
    %4 = arith.cmpi ne, %3, %c0_i32_0 : i32
    scf.if %4 {
      %cst_5 = arith.constant 0.000000e+00 : f32
      %12 = vector.broadcast %cst_5 : f32 to vector<1x8x128xf32>
      %c0 = arith.constant 0 : index
      %c0_6 = arith.constant 0 : index
      %c0_7 = arith.constant 0 : index
      %13 = vector.load %arg3[%c0, %c0_6, %c0_7] : memref<1x8x128xf32, #tpu.memory_space<vmem>>, vector<1x8x128xf32>
      tpu.vector_store %arg3[%c0, %c0_6, %c0_7], %12 {strides = array<i32>} : memref<1x8x128xf32, #tpu.memory_space<vmem>>, vector<1x8x128xf32>,
    } else {
    }
    %cst = arith.constant 0.000000e+00 : f32
    %5 = vector.broadcast %cst : f32 to vector<8x8x128xf32>
    %c1_i32_1 = arith.constant 1 : i32
    %6 = arith.cmpi slt, %1, %c1_i32_1 : i32
    %7 = arith.extui %6 : i1 to i32
    %c0_i32_2 = arith.constant 0 : i32
    %8 = arith.cmpi ne, %7, %c0_i32_2 : i32
    scf.if %8 {
      %c0_i32_5 = arith.constant 0 : i32
      %c64_i32 = arith.constant 64 : i32
      %12 = arith.muli %c0_i32_5, %c64_i32 : i32
      %13 = tpu.assume_multiple %12, 64 : i32
      %14 = arith.index_cast %13 : i32 to index
      %c0 = arith.constant 0 : index
      %15 = vector.load %arg2[%14, %c0] : memref<64x128xf32, #tpu.memory_space<vmem>>, vector<64x128xf32>
      %16 = vector.shape_cast %15 : vector<64x128xf32> to vector<1x8x8x128xf32>
      %cst_6 = arith.constant dense<0.000000e+00> : vector<8x8x128xf32>
      %17 = vector.multi_reduction <add>, %16, %cst_6 [0] : vector<1x8x8x128xf32> to vector<8x8x128xf32>
      %18 = arith.addf %5, %17 : vector<8x8x128xf32>
      %c1_i32_7 = arith.constant 1 : i32
      %c0_8 = arith.constant 0 : index
      %c0_9 = arith.constant 0 : index
      %c0_10 = arith.constant 0 : index
      %19 = vector.load %arg3[%c0_8, %c0_9, %c0_10] : memref<1x8x128xf32, #tpu.memory_space<vmem>>, vector<1x8x128xf32>
      %cst_11 = arith.constant dense<0.000000e+00> : vector<8x128xf32>
      %20 = vector.multi_reduction <add>, %18, %cst_11 [0] : vector<8x8x128xf32> to vector<8x128xf32>
      %21 = vector.shape_cast %20 : vector<8x128xf32> to vector<1x8x128xf32>
      %22 = arith.addf %19, %21 : vector<1x8x128xf32>
      %c0_12 = arith.constant 0 : index
      %c0_13 = arith.constant 0 : index
      %c0_14 = arith.constant 0 : index
      %23 = vector.load %arg3[%c0_12, %c0_13, %c0_14] : memref<1x8x128xf32, #tpu.memory_space<vmem>>, vector<1x8x128xf32>
      tpu.vector_store %arg3[%c0_12, %c0_13, %c0_14], %22 {strides = array<i32>} : memref<1x8x128xf32, #tpu.memory_space<vmem>>, vector<1x8x128xf32>,
    } else {
    }
    %c1_i32_3 = arith.constant 1 : i32
    %9 = arith.cmpi sge, %1, %c1_i32_3 : i32
    %10 = arith.extui %9 : i1 to i32
    %c0_i32_4 = arith.constant 0 : i32
    %11 = arith.cmpi ne, %10, %c0_i32_4 : i32
    scf.if %11 {
      %c0_i32_5 = arith.constant 0 : i32
      %c64_i32 = arith.constant 64 : i32
      %12 = arith.muli %c0_i32_5, %c64_i32 : i32
      %13 = tpu.assume_multiple %12, 64 : i32
      %14 = arith.index_cast %13 : i32 to index
      %c0 = arith.constant 0 : index
      %15 = vector.load %arg2[%14, %c0] : memref<64x128xf32, #tpu.memory_space<vmem>>, vector<64x128xf32>
      %c64_i32_6 = arith.constant 64 : i32
      %16 = arith.muli %1, %c64_i32_6 : i32
      %c64_i32_7 = arith.constant 64 : i32
      %17 = arith.subi %c64_i32_7, %16 : i32
      %18 = arith.subi %17, %12 : i32
      %19 = tpu.iota {dimensions = array<i32: 0>} : vector<64x128xi32>
      %20 = vector.broadcast %18 : i32 to vector<64x128xi32>
      %21 = arith.cmpi slt, %19, %20 : vector<64x128xi32>
      %cst_8 = arith.constant 0.000000e+00 : f32
      %22 = vector.broadcast %cst_8 : f32 to vector<64x128xf32>
      %23 = arith.select %21, %15, %22 : vector<64x128xi1>, vector<64x128xf32>
      %24 = vector.shape_cast %23 : vector<64x128xf32> to vector<1x8x8x128xf32>
      %cst_9 = arith.constant dense<0.000000e+00> : vector<8x8x128xf32>
      %25 = vector.multi_reduction <add>, %24, %cst_9 [0] : vector<1x8x8x128xf32> to vector<8x8x128xf32>
      %26 = arith.addf %5, %25 : vector<8x8x128xf32>
      %c1_i32_10 = arith.constant 1 : i32
      %c0_11 = arith.constant 0 : index
      %c0_12 = arith.constant 0 : index
      %c0_13 = arith.constant 0 : index
      %27 = vector.load %arg3[%c0_11, %c0_12, %c0_13] : memref<1x8x128xf32, #tpu.memory_space<vmem>>, vector<1x8x128xf32>
      %cst_14 = arith.constant dense<0.000000e+00> : vector<8x128xf32>
      %28 = vector.multi_reduction <add>, %26, %cst_14 [0] : vector<8x8x128xf32> to vector<8x128xf32>
      %29 = vector.shape_cast %28 : vector<8x128xf32> to vector<1x8x128xf32>
      %30 = arith.addf %27, %29 : vector<1x8x128xf32>
      %c0_15 = arith.constant 0 : index
      %c0_16 = arith.constant 0 : index
      %c0_17 = arith.constant 0 : index
      %31 = vector.load %arg3[%c0_15, %c0_16, %c0_17] : memref<1x8x128xf32, #tpu.memory_space<vmem>>, vector<1x8x128xf32>
      tpu.vector_store %arg3[%c0_15, %c0_16, %c0_17], %30 {strides = array<i32>} : memref<1x8x128xf32, #tpu.memory_space<vmem>>, vector<1x8x128xf32>,
    } else {
    }
    return
  }
  func.func @transform_0(%arg0: i32, %arg1: i32) -> (i32, i32) {
    %c1_i32 = arith.constant 1 : i32
    %0 = arith.muli %arg0, %c1_i32 : i32
    %1 = arith.addi %0, %arg1 : i32
    %c0_i32 = arith.constant 0 : i32
    %2 = arith.minsi %1, %c0_i32 : i32
    %c0_i32_0 = arith.constant 0 : i32
    %c0_i32_1 = arith.constant 0 : i32
    return %2, %c0_i32_0 : i32, i32
  }
  func.func @transform_1(%arg0: i32, %arg1: i32) -> (i32, i32, i32) {
    %c0_i32 = arith.constant 0 : i32
    %c0_i32_0 = arith.constant 0 : i32
    %c0_i32_1 = arith.constant 0 : i32
    return %arg0, %c0_i32, %c0_i32_0 : i32, i32, i32
  }
}

</mosaic_0001>

<bundles_post_ra>
// kernel: tpu_custom_call.1
= control target key start
LH: loop header
LB: loop body
LE: loop exit
PB: predicated region body
PF: predicated region fallthrough
CT: control target
= control target key end

     0   :  { %6 = vsyncpa [#allocation3], 0  ;;  %s241_s0 = inlined_call_operand.hbm [shape: f32[64,128], index: 0, kind: input, shape index: {}]   ;;  %s242_s1 = inlined_call_operand.hbm [shape: f32[1,8,128], index: 1, kind: output, shape index: {}]  }
   0x1   :  { %7 = vsyncpa [#allocation4], 0  ;;  %s18_s8 = sshll.u32 %s241_s0, 4  ;;  %s221_s9 = smov [#allocation2]   ;;  %s19_s8 = int_to_ptr.hbm [resolvable:$true] %s18_s8 }
   0x2   :  { %s20_s10 = sshll.u32 %s221_s9, 4  ;;  %s222_s11 = smov 128   ;;  %s21_s10 = int_to_ptr.vmem [resolvable:$true] %s20_s10 }
   0x3   :  { %s223_s12 = smov 8  }
   0x4   :  { %26 = dma.hbm_to_vmem [thread:$0]  %s19_s8, 1024, %s21_s10, [#allocation3], %s222_s11, %s222_s11, %s223_s12  }
   0x5   :  { %217 = dma.done.wait [#allocation3], 1024  }
   0x6   :  { %218 = vsyncadd [#allocation3], 4294966272  ;;  %v45_v0 = vld [vmem:[#allocation2] sm:$0xff]  ;;  %v46_v1 = vld [vmem:[#allocation2 + $0x8] sm:$0xff]  ;;  %s224_s0 = smov [#allocation5]   ;;  %s152_s16 = sshll.u32 %s242_s1, 4  ;;  %s153_s16 = int_to_ptr.hbm [resolvable:$true] %s152_s16 }
   0x7   :  { %v47_v2 = vld [vmem:[#allocation2 + $0x10] sm:$0xff]  ;;  %v70_v3 = vadd.f32 %v46_v1, %v45_v0  ;;  %v48_v4 = vld [vmem:[#allocation2 + $0x18] sm:$0xff]  ;;  %v49_v6 = vld [vmem:[#allocation2 + $0x20] sm:$0xff]  ;;  %s150_s13 = sshll.u32 %s224_s0, 4  ;;  %s151_s13 = int_to_ptr.vmem [resolvable:$true] %s150_s13 }
   0x8   :  { %v50_v8 = vld [vmem:[#allocation2 + $0x28] sm:$0xff]  ;;  %v51_v10 = vld [vmem:[#allocation2 + $0x30] sm:$0xff]  ;;  %v52_v12 = vld [vmem:[#allocation2 + $0x38] sm:$0xff] }
   0x9   :  { %v71_v5 = vadd.f32 %v70_v3, %v47_v2 }
   0xb   :  { %v72_v7 = vadd.f32 %v71_v5, %v48_v4 }
   0xd   :  { %v73_v9 = vadd.f32 %v72_v7, %v49_v6 }
   0xf   :  { %v74_v11 = vadd.f32 %v73_v9, %v50_v8 }
  0x11   :  { %v75_v13 = vadd.f32 %v74_v11, %v51_v10 }
  0x13   :  { %v76_v14 = vadd.f32 %v75_v13, %v52_v12 }
  0x15   :  { %78 = vst [vmem:[#allocation5] sm:$0xff] %v76_v14 }
  0x16   :  { %155 = dma.vmem_to_hbm [thread:$0]  %s151_s13, 128, %s153_s16, [#allocation4]  }
  0x17   :  { %219 = dma.done.wait [#allocation4], 128  }
  0x18   :  { %220 = vsyncadd [#allocation4], 4294967168 }
  0x19   :  { %160 = vsyncpa [#allocation3], 1 }
  0x1a   :  { %161 = vsyncpa [#allocation4], 1 }

</bundles_post_ra>
